<compile_context>
chip_gen: v7x
topology: tpu7x:2x2x1
jax: 0.10.0
libtpu: 0.0.40
codegen_flags: <defaults>
</compile_context>

<pallas_src>
import math

import jax
import jax.numpy as jnp
from jax.experimental import pallas as pl
from jax.experimental.pallas import tpu as pltpu


def _sinusoidal_kernel(x_ref, f_ref, p_ref, o_ref):
    # x_ref: (TB, 1) f32 positions; f_ref: (1, dim) duplicated freqs;
    # p_ref: (1, dim) phase (0 | pi/2); o_ref: (TB, dim) f32 output.
    # One VPU mul + one VPU add + one EUP sin per element; a single
    # unmasked, lane-dense full-width store.
    o_ref[...] = jnp.sin(x_ref[...] * f_ref[...] + p_ref[...])


def _choose_block_b(b: int, dim: int) -> int:
    """Batch tile: >=2 grid steps for v7x megacore, sublane-aligned, VMEM-safe."""
    if b <= 8:
        return b  # tiny batch: single block, grid == (1,)
    # Aim for ~4 grid steps, rounded up to a sublane multiple of 8.
    tb = (((b + 3) // 4) + 7) // 8 * 8
    # Keep 2 * block_b * dim * 4 bytes (double-buffered output block) <= ~8 MiB
    # so the same tiling also fits v7x's 64 MiB VMEM / 32 MiB scoped default.
    vmem_cap = max(8, ((8 << 20) // (2 * dim * 4)) // 8 * 8)
    return max(8, min(tb, 1024, vmem_cap, b))


def sinusoidal_positional_embedding(x: jax.Array, dim: int) -> jax.Array:
    """x: (B,) float positions/timesteps -> (B, dim) f32 embedding [sin | cos]."""
    assert x.ndim == 1, "expects a 1-D batch of scalar positions"
    assert dim % 2 == 0, "dim must be even (sin/cos halves)"
    b = x.shape[0]
    half = dim // 2

    # Trace-time tables (tiny (1, dim) VMEM constants; no in-kernel exp).
    # Built with jnp f32 in the same op order as the PyTorch module so the
    # in-kernel product x * f is bit-identical to the module's `emb`.
    scale = math.log(10000.0) / half
    freqs = jnp.exp(jnp.arange(half, dtype=jnp.float32) * -scale)      # (half,)
    freqs_full = jnp.concatenate([freqs, freqs]).reshape(1, dim)       # (1, dim)
    phase = jnp.concatenate(
        [jnp.zeros((half,), jnp.float32),
         jnp.full((half,), math.pi / 2, dtype=jnp.float32)]
    ).reshape(1, dim)                                                  # (1, dim)

    x2d = x.astype(jnp.float32).reshape(b, 1)

    block_b = _choose_block_b(b, dim)
    grid = (pl.cdiv(b, block_b),)

    return pl.pallas_call(
        _sinusoidal_kernel,
        out_shape=jax.ShapeDtypeStruct((b, dim), jnp.float32),
        grid_spec=pltpu.PrefetchScalarGridSpec(
            num_scalar_prefetch=0,
            grid=grid,
            in_specs=[
                pl.BlockSpec((block_b, 1), lambda i: (i, 0)),   # positions
                pl.BlockSpec((1, dim), lambda i: (0, 0)),       # duplicated freqs
                pl.BlockSpec((1, dim), lambda i: (0, 0)),       # phase 0 | pi/2
            ],
            out_specs=pl.BlockSpec((block_b, dim), lambda i: (i, 0)),
        ),
        compiler_params=pltpu.CompilerParams(
            # Batch blocks are independent -> shards across v7x's two TCs;
            # near-zero impact (harmless) on single-TC v5e/v6e.
            dimension_semantics=("parallel",),
        ),
        cost_estimate=pl.CostEstimate(
            flops=2 * b * dim,                 # mul + add per output element
            transcendentals=b * dim,           # one sin per output element
            bytes_accessed=4 * (b * dim + b + 2 * dim),
        ),
    )(x2d, freqs_full, phase)


def _reference(x: jax.Array, dim: int) -> jax.Array:
    # Direct transcription of the PyTorch module's forward.
    half = dim // 2
    e = math.log(10000.0) / half
    freqs = jnp.exp(jnp.arange(half, dtype=jnp.float32) * -e)
    emb = x.astype(jnp.float32)[:, None] * freqs[None, :]
    return jnp.concatenate([jnp.sin(emb), jnp.cos(emb)], axis=-1)


if __name__ == "__main__":
    key = jax.random.PRNGKey(0)
    # Small, module-consistent shapes; ragged B exercises the cdiv / partial
    # last-block path and gives a multi-step grid.
    B, DIM = 40, 32
    # Timestep-like positive inputs.
    x = jax.random.uniform(key, (B,), dtype=jnp.float32, minval=0.0, maxval=100.0)

    out = sinusoidal_positional_embedding(x, DIM)
    out = jax.block_until_ready(out)
    ref = _reference(x, DIM)

    assert out.shape == (B, DIM) and out.dtype == jnp.float32
    # cos(t) is computed as sin(t + pi/2); the only deviation from the direct
    # cos reference is the f32 rounding of (t + pi/2) (< ~1 ulp of t, i.e. a
    # few e-6 at t ~ 100) plus sin-vs-cos implementation ulps.  1e-4 is ample
    # headroom while still catching any real bug.
    assert jnp.allclose(out, ref, atol=1e-4, rtol=1e-4), "mismatch vs reference"
    print("KERNEL_OK")
</pallas_src>

<mosaic_0001>
module attributes {stable_mosaic.version = 11 : i64} {
  func.func @_sinusoidal_kernel(%arg0: i32, %arg1: memref<16x1xf32, #tpu.memory_space<vmem>>, %arg2: memref<1x32xf32, #tpu.memory_space<vmem>>, %arg3: memref<1x32xf32, #tpu.memory_space<vmem>>, %arg4: memref<16x32xf32, #tpu.memory_space<vmem>>) attributes {dimension_semantics = [#tpu.dimension_semantics<parallel>], iteration_bounds = array<i64: 3>, scalar_prefetch = 0 : i64, scratch_operands = 0 : i64, tpu.core_type = #tpu.core_type<tc>, window_params = [{transform_indices = @transform_0, window_bounds = array<i64: 16, 1>}, {pipeline_mode = #tpu.pipeline_mode<synchronous>, transform_indices = @transform_1, window_bounds = array<i64: 1, 32>}, {pipeline_mode = #tpu.pipeline_mode<synchronous>, transform_indices = @transform_2, window_bounds = array<i64: 1, 32>}, {transform_indices = @transform_3, window_bounds = array<i64: 16, 32>}]} {
    %c0 = arith.constant 0 : index
    %c0_0 = arith.constant 0 : index
    %0 = vector.load %arg1[%c0, %c0_0] : memref<16x1xf32, #tpu.memory_space<vmem>>, vector<16x1xf32>
    %c0_1 = arith.constant 0 : index
    %c0_2 = arith.constant 0 : index
    %1 = vector.load %arg2[%c0_1, %c0_2] : memref<1x32xf32, #tpu.memory_space<vmem>>, vector<1x32xf32>
    %2 = vector.broadcast %0 : vector<16x1xf32> to vector<16x32xf32>
    %3 = vector.broadcast %1 : vector<1x32xf32> to vector<16x32xf32>
    %4 = arith.mulf %2, %3 : vector<16x32xf32>
    %c0_3 = arith.constant 0 : index
    %c0_4 = arith.constant 0 : index
    %5 = vector.load %arg3[%c0_3, %c0_4] : memref<1x32xf32, #tpu.memory_space<vmem>>, vector<1x32xf32>
    %6 = vector.broadcast %5 : vector<1x32xf32> to vector<16x32xf32>
    %7 = arith.addf %4, %6 : vector<16x32xf32>
    %8 = math.sin %7 : vector<16x32xf32>
    %c0_5 = arith.constant 0 : index
    %c0_6 = arith.constant 0 : index
    %9 = vector.load %arg4[%c0_5, %c0_6] : memref<16x32xf32, #tpu.memory_space<vmem>>, vector<16x32xf32>
    tpu.vector_store %arg4[%c0_5, %c0_6], %8 {strides = array<i32>} : memref<16x32xf32, #tpu.memory_space<vmem>>, vector<16x32xf32>,
    return
  }
  func.func @transform_0(%arg0: i32) -> (i32, i32) {
    %c0_i32 = arith.constant 0 : i32
    %c0_i32_0 = arith.constant 0 : i32
    return %arg0, %c0_i32 : i32, i32
  }
  func.func @transform_1(%arg0: i32) -> (i32, i32) {
    %c0_i32 = arith.constant 0 : i32
    %c0_i32_0 = arith.constant 0 : i32
    %c0_i32_1 = arith.constant 0 : i32
    return %c0_i32, %c0_i32_0 : i32, i32
  }
  func.func @transform_2(%arg0: i32) -> (i32, i32) {
    %c0_i32 = arith.constant 0 : i32
    %c0_i32_0 = arith.constant 0 : i32
    %c0_i32_1 = arith.constant 0 : i32
    return %c0_i32, %c0_i32_0 : i32, i32
  }
  func.func @transform_3(%arg0: i32) -> (i32, i32) {
    %c0_i32 = arith.constant 0 : i32
    %c0_i32_0 = arith.constant 0 : i32
    return %arg0, %c0_i32 : i32, i32
  }
}

</mosaic_0001>

<bundles_post_ra>
// kernel: tpu_custom_call.1
= control target key start
LH: loop header
LB: loop body
LE: loop exit
PB: predicated region body
PF: predicated region fallthrough
CT: control target
= control target key end

     0   :  { %s916_s12 = smov 0   ;;  %s918_s13 = smov 0   ;;  %s1075_s0 = inlined_call_operand.vmem [shape: f32[40,1], index: 0, kind: input, shape index: {}]   ;;  %s1076_s1 = inlined_call_operand.vmem [shape: f32[1,32], index: 1, kind: input, shape index: {}]   ;;  %s1077_s2 = inlined_call_operand.vmem [shape: f32[1,32], index: 2, kind: input, shape index: {}]   ;;  %s1078_s3 = inlined_call_operand.vmem [shape: f32[40,32], index: 3, kind: output, shape index: {}]  }
   0x1   :  { %s920_s14 = smov 0  }
   0x2 LB: > { %s929_s15 = sadd.s32 4294967295, %s855_s14   ;;  %s931_s16 = sadd.s32 1, %s855_s14   ;;  %s855_s14 = sphi %s920_s14, %s1084_s14   ;;  %s851_s13 = sphi %s918_s13, %s1083_s13   ;;  %s847_s12 = sphi %s916_s12, %s1082_s12  }
   0x3   : > { %s85_s17 = ssub.s32 %s855_s14, %s931_s16  ;;  %s88_s18 = sadd.s32 1, %s851_s13 }
   0x4   : > { %p86_p0 = scmp.eq.s32.totalorder %s85_s17, 0  ;;  %p98_p1 = scmp.ne.s32.totalorder %s851_s13, %s847_s12 }
   0x5   : > { %p99_p2 = scmp.eq.s32.totalorder %s929_s15, 2  ;;  %p655_p3 = scmp.ge.s32.totalorder %s855_s14, 1 }
   0x6   : > { %s939_s19 = scalar_select %p86_p0, %s851_s13, %s88_s18  }
   0x7   : > { %p941_p4 = por %p99_p2, %p98_p1  ;;  %p146_p5 = scmp.lt.s32.totalorder %s855_s14, 4 }
   0x9   : > { %p147_p6 = pnand %p655_p3, %p146_p5 }
   0xa   : > { %s946_s21 = sshll.u32 (!%p147_p6), %s929_s15, 1  ;;  %v889_v0 = vmov (!%p147_p6), 0   ;;  %v659_v3 = vld [vmem:[%s1076_s1] ss:$0 sm:$0xff] (!%p147_p6)  ;;  %v890_v27 = vmov (!%p147_p6), 683565275  }
   0xb   : > { %150 = sbr.rel (%p147_p6) target bundleno = 295 (0x127), region = 32  ;;  %792 = vset.pattern.permute.xlu0 (!%p147_p6), %v889_v0  ;;  %p178_p7 = scmp.lt.s32.totalorder (!%p147_p6), %s946_s21, 4  ;;  %v660_v4 = vld [vmem:[%s1077_s2] ss:$0 sm:$0xff] (!%p147_p6)  ;;  %v891_v31 = vmov (!%p147_p6), 2475754826  }
   0xc   : > { %v892_v33 = vmov (!%p147_p6), 2131351028   ;;  %v893_v35 = vmov (!%p147_p6), 2102212464   ;;  %v894_v37 = vmov (!%p147_p6), 920167782  }
   0xd   : > { %v895_v44 = vmov (!%p147_p6), 1326507024   ;;  %s170_s4 = sand.u32 (!%p147_p6), 1, %s847_s12  }
   0xe   : > { %s656_s5 = sshll.u32 (!%p147_p6), %s170_s4, 4 }
   0xf   : > { %s1027_s6 = scalar_lea.vmem (!%p147_p6), [#allocation2], %s656_s5  }
  0x12   : > { %s179_s22 = scalar_select %p178_p7, %s946_s21, 4 }
  0x13   : > { %s441_s7 = ssub.s32 (%p941_p4), 5, %s946_s21  ;;  %s686_s8 = sshll.u32 (%p941_p4), %s929_s15, 4 }
  0x14   : > { %s658_s23 = sshll.u32 %s179_s22, 3  ;;  %p442_p8 = scmp.lt.s32.totalorder (%p941_p4), %s441_s7, 2 }
  0x15   : > { %s181_s26 = scalar_lea.vmem %s1075_s0, %s658_s23  ;;  %s1041_s11 = scalar_lea.vmem (%p941_p4), %s1078_s3, %s686_s8  }
  0x16   : > { %v192_v1 = vld [vmem:[%s181_s26] sm:$0xff]  ;;  %v193_v2 = vld [vmem:[%s181_s26 + $0x8] sm:$0xff] }
  0x17   : > { %197 = vperm.xlu0 %792, %v192_v1  }
  0x1b   : > { %202 = vperm.xlu0 %792, %v193_v2  }
  0x96   : > { %v198_v5 = vpop.permute.xlu0 %197 }
  0x97   : > { %v211_v6 = vmul.f32 %v659_v3, %v198_v5 }
  0x99   : > { %v959_v7 = vadd.f32 %v660_v4, %v211_v6 }
  0x9a   : > { %v203_v8 = vpop.permute.xlu0 %202 }
  0x9b   : > { %v222_v9 = vand.u32 2147483647, %v959_v7  ;;  %v225_v10 = vand.u32 2139095040, %v959_v7  ;;  %v212_v11 = vmul.f32 %v659_v3, %v203_v8  ;;  %vm224_vm14 = vcmp.lt.s32.totalorder %v959_v7, 0 }
  0x9d   : > { %v226_v12 = vshrl.u32 %v225_v10, 23  ;;  %v229_v13 = vand.u32 8388607, %v222_v9  ;;  %v965_v14 = vadd.f32 %v660_v4, %v212_v11  ;;  %vm223_vm15 = vcmp.le.f32.partialorder %v222_v9, 0.7853982 }
  0x9f   : > { %v661_v15 = vadd.s32 4294967169, %v226_v12  ;;  %v329_v16 = vand.u32 2139095040, %v965_v14  ;;  %v230_v18 = vor.u32 8388608, %v229_v13  ;;  %v326_v20 = vand.u32 2147483647, %v965_v14 }
  0xa1   : > { %v232_v17 = vadd.s32 1, %v661_v15  ;;  %v330_v19 = vshrl.u32 %v329_v16, 23  ;;  %v969_v25 = vshll.u32 %v230_v18, 8  ;;  %v333_v29 = vand.u32 8388607, %v326_v20 }
  0xa3   : > { %vm233_vm0 = vcmp.gt.s32.totalorder %v232_v17, 0  ;;  %v665_v22 = vadd.s32 4294967169, %v330_v19  ;;  %v334_v59 = vor.u32 8388608, %v333_v29 }
  0xa4   : > { %v234_v21 = vsel %vm233_vm0, %v232_v17, 0  ;;  %vm328_vm0 = vcmp.lt.s32.totalorder %v965_v14, 0 }
  0xa5   : > { %v235_v23 = vshrl.u32 %v234_v21, 5  ;;  %v236_v24 = vand.u32 31, %v234_v21  ;;  %v336_v30 = vadd.s32 1, %v665_v22  ;;  %v374_v10 = vshll.u32 %v334_v59, 8 }
  0xa7   : > { %v237_v26 = vsub.s32 32, %v236_v24  ;;  %v239_v28 = vshll.u32 %v890_v27, %v236_v24  ;;  %v242_v32 = vshll.u32 %v891_v31, %v236_v24  ;;  %v245_v34 = vshll.u32 %v892_v33, %v236_v24 }
  0xa8   : > { %v248_v36 = vshll.u32 %v893_v35, %v236_v24  ;;  %v251_v38 = vshll.u32 %v894_v37, %v236_v24  ;;  %vm254_vm1 = vcmp.lt.s32.totalorder %v235_v23, 1  ;;  %vm256_vm2 = vcmp.lt.s32.totalorder %v235_v23, 3 }
  0xa9   : > { %v240_v39 = vshrl.u32 %v891_v31, %v237_v26  ;;  %v243_v40 = vshrl.u32 %v892_v33, %v237_v26  ;;  %v246_v41 = vshrl.u32 %v893_v35, %v237_v26  ;;  %v238_v42 = vshrl.u32 %v890_v27, %v237_v26 }
  0xaa   : > { %v249_v43 = vshrl.u32 %v894_v37, %v237_v26  ;;  %v252_v45 = vshrl.u32 %v895_v44, %v237_v26  ;;  %vm337_vm3 = vcmp.gt.s32.totalorder %v336_v30, 0  ;;  %vm257_vm4 = vcmp.lt.s32.totalorder %v235_v23, 4 }
  0xab   : > { %v241_v46 = vor.u32 %v240_v39, %v239_v28  ;;  %v244_v47 = vor.u32 %v243_v40, %v242_v32  ;;  %v247_v48 = vor.u32 %v246_v41, %v245_v34  ;;  %v338_v51 = vsel %vm337_vm3, %v336_v30, 0 }
  0xac   : > { %v250_v49 = vor.u32 %v249_v43, %v248_v36  ;;  %v253_v50 = vor.u32 %v252_v45, %v251_v38  ;;  %vm255_vm5 = vcmp.lt.s32.totalorder %v235_v23, 2  ;;  %v340_v62 = vand.u32 31, %v338_v51 }
  0xad   : > { %v258_v52 = vsel %vm254_vm1, %v238_v42, %v241_v46  ;;  %v259_v53 = vsel %vm257_vm4, %v247_v48, 2102212464  ;;  %v262_v54 = vsel %vm254_vm1, %v241_v46, %v244_v47  ;;  %v266_v55 = vsel %vm254_vm1, %v244_v47, %v247_v48 }
  0xae   : > { %v260_v56 = vsel %vm256_vm2, %v244_v47, %v259_v53  ;;  %v263_v57 = vsel %vm257_vm4, %v250_v49, 920167782  ;;  %v267_v58 = vsel %vm257_vm4, %v253_v50, 1326507024  ;;  %v339_v6 = vshrl.u32 %v338_v51, 5 }
  0xaf   : > { %v264_v60 = vsel %vm256_vm2, %v247_v48, %v263_v57  ;;  %v268_v61 = vsel %vm256_vm2, %v250_v49, %v267_v58  ;;  %v261_v63 = vsel %vm255_vm5, %v258_v52, %v260_v56  ;;  %v341_v8 = vsub.s32 32, %v340_v62 }
  0xb0   : > { %v265_v0 = vsel %vm255_vm5, %v262_v54, %v264_v60  ;;  %v269_v1 = vsel %vm255_vm5, %v266_v55, %v268_v61  ;;  %v277_v11 = vmul.u32 %v969_v25, %v261_v63  ;;  %v343_v12 = vshll.u32 %v890_v27, %v340_v62 }
  0xb1   : > { %v982_v2 = vmul.u32.u64.low %v969_v25, %v269_v1  ;;  %v983_v3 = vmul.u32.u64.high %v969_v25, %v269_v1, %v982_v2  ;;  %v986_v4 = vmul.u32.u64.low %v969_v25, %v265_v0  ;;  %v987_v5 = vmul.u32.u64.high %v969_v25, %v265_v0, %v986_v4 }
  0xb2   : > { %v346_v13 = vshll.u32 %v891_v31, %v340_v62  ;;  %v349_v15 = vshll.u32 %v892_v33, %v340_v62  ;;  %v344_v16 = vshrl.u32 %v891_v31, %v341_v8  ;;  %v347_v17 = vshrl.u32 %v892_v33, %v341_v8 }
  0xb3   : > { %v350_v18 = vshrl.u32 %v893_v35, %v341_v8  ;;  %v352_v19 = vshll.u32 %v893_v35, %v340_v62  ;;  %vm279_vm6 = vc.u32 %v983_v3, %v986_v4  ;;  %v280_v21 = vadd.s32 1, %v987_v5 }
  0xb4   : > { %v353_v22 = vshrl.u32 %v894_v37, %v341_v8  ;;  %v355_v23 = vshll.u32 %v894_v37, %v340_v62  ;;  %v345_v24 = vor.u32 %v344_v16, %v343_v12  ;;  %v348_v26 = vor.u32 %v347_v17, %v346_v13 }
  0xb5   : > { %v351_v28 = vor.u32 %v350_v18, %v349_v15  ;;  %v356_v29 = vshrl.u32 %v895_v44, %v341_v8  ;;  %v281_v25 = vsel %vm279_vm6, %v280_v21, %v987_v5  ;;  %vm358_vm7 = vcmp.lt.s32.totalorder %v339_v6, 1 }
  0xb6   : > { %v354_v30 = vor.u32 %v353_v22, %v352_v19  ;;  %vm361_vm8 = vcmp.lt.s32.totalorder %v339_v6, 4  ;;  %v282_v31 = vadd.s32 %v281_v25, %v277_v11  ;;  %vm360_vm9 = vcmp.lt.s32.totalorder %v339_v6, 3 }
  0xb7   : > { %v357_v32 = vor.u32 %v356_v29, %v355_v23  ;;  %v363_v33 = vsel %vm361_vm8, %v351_v28, 2102212464  ;;  %v342_v34 = vshrl.u32 %v890_v27, %v341_v8  ;;  %v366_v35 = vsel %vm358_vm7, %v345_v24, %v348_v26 }
  0xb8   : > { %v367_v36 = vsel %vm361_vm8, %v354_v30, 920167782  ;;  %v370_v38 = vsel %vm358_vm7, %v348_v26, %v351_v28  ;;  %v283_v39 = vadd.s32 536870912, %v282_v31  ;;  %vm359_vm10 = vcmp.lt.s32.totalorder %v339_v6, 2 }
  0xb9   : > { %v368_v37 = vsel %vm360_vm9, %v351_v28, %v367_v36  ;;  %v371_v40 = vsel %vm361_vm8, %v357_v32, 1326507024  ;;  %v362_v41 = vsel %vm358_vm7, %v342_v34, %v345_v24  ;;  %v364_v42 = vsel %vm360_vm9, %v348_v26, %v363_v33 }
  0xba   : > { %v369_v43 = vsel %vm359_vm10, %v366_v35, %v368_v37  ;;  %v372_v44 = vsel %vm360_vm9, %v354_v30, %v371_v40  ;;  %v284_v45 = vshrl.u32 %v283_v39, 30  ;;  %v365_v51 = vsel %vm359_vm10, %v362_v41, %v364_v42 }
  0xbb   : > { %v373_v46 = vsel %vm359_vm10, %v370_v38, %v372_v44  ;;  %v997_v47 = vmul.u32.u64.low %v374_v10, %v369_v43  ;;  %v998_v48 = vmul.u32.u64.high %v374_v10, %v369_v43, %v997_v47  ;;  %v381_v54 = vmul.u32 %v374_v10, %v365_v51 }
  0xbc   : > { %v1000_v49 = vmul.u32.u64.low %v374_v10, %v373_v46  ;;  %v1001_v50 = vmul.u32.u64.high %v374_v10, %v373_v46, %v1000_v49  ;;  %v285_v27 = vshll.u32 %v284_v45, 30  ;;  %v278_v2 = vadd.s32 %v986_v4, %v983_v3 }
  0xbd   : > { %v384_v53 = vadd.s32 1, %v998_v48  ;;  %v308_v24 = vsub.s32 4, %v284_v45  ;;  %vm1017_vm1 = vcmp.le.f32.partialorder %v326_v20, 0.7853982  ;;  %vm430_vm4 = vcmask 261120  }
  0xbe   : > { %v286_v52 = vsub.s32 %v282_v31, %v285_v27  ;;  %vm383_vm11 = vc.u32 %v1001_v50, %v997_v47  ;;  %v382_v3 = vadd.s32 %v997_v47, %v1001_v50  ;;  %vm314_vm6 = vweird.f32 %v959_v7 }
  0xbf   : > { %v385_v56 = vsel %vm383_vm11, %v384_v53, %v998_v48  ;;  %v309_v33 = vsel %vm224_vm14, %v308_v24, %v284_v45  ;;  %vm418_vm10 = vweird.f32 %v965_v14 }
  0xc0   : > { %v288_v55 = vsub.s32 0, %v286_v52  ;;  %v386_v57 = vadd.s32 %v385_v56, %v381_v54  ;;  %v311_v38 = vsel %vm223_vm15, 0, %v309_v33 }
  0xc1   : > { %v315_v41 = vadd.s32 3, %v311_v38 }
  0xc2   : > { %v662_v58 = vmin.u32 %v288_v55, %v286_v52  ;;  %v387_v59 = vadd.s32 536870912, %v386_v57 }
  0xc3   : > { %v316_v46 = vand.u32 3, %v315_v41 }
  0xc4   : > { %v290_v60 = vclz %v662_v58  ;;  %v388_v61 = vshrl.u32 %v387_v59, 30 }
  0xc5   : > { %vm321_vm2 = vcmp.eq.s32.totalorder %v316_v46, 2  ;;  %vm318_vm3 = vcmp.eq.s32.totalorder %v316_v46, 0  ;;  %vm317_vm5 = vcmp.lt.s32.totalorder %v316_v46, 2 }
  0xc6   : > { %v663_v62 = vadd.s32 4294967294, %v290_v60  ;;  %v389_v63 = vshll.u32 %v388_v61, 30  ;;  %v412_v43 = vsub.s32 4, %v388_v61 }
  0xc8   : > { %vm664_vm12 = vcmp.lt.s32.totalorder %v663_v62, 0  ;;  %v390_v1 = vsub.s32 %v386_v57, %v389_v63  ;;  %v413_v47 = vsel %vm328_vm0, %v412_v43, %v388_v61 }
  0xc9   : > { %v293_v0 = vsel %vm664_vm12, 0, %v663_v62 }
  0xca   : > { %v294_v5 = vsub.s32 32, %v293_v0  ;;  %v298_v6 = vsub.s32 4294967266, %v293_v0  ;;  %v392_v8 = vsub.s32 0, %v390_v1  ;;  %v295_v10 = vshll.u32 %v286_v52, %v293_v0 }
  0xcb   : > { %v415_v52 = vsel %vm1017_vm1, 0, %v413_v47 }
  0xcc   : > { %v296_v11 = vshrl.u32 %v278_v2, %v294_v5  ;;  %v299_v12 = vadd.s32 127, %v298_v6  ;;  %v666_v13 = vmin.u32 %v392_v8, %v390_v1  ;;  %v419_v55 = vadd.s32 3, %v415_v52 }
  0xce   : > { %v297_v15 = vor.u32 %v296_v11, %v295_v10  ;;  %v300_v16 = vshll.u32 %v299_v12, 23  ;;  %v394_v17 = vclz %v666_v13  ;;  %v420_v57 = vand.u32 3, %v419_v55 }
  0xd0   : > { %v301_v18 = vor.u32 4788187, %v300_v16  ;;  %v667_v19 = vadd.s32 4294967294, %v394_v17  ;;  %v304_v22 = vcvt.s32.f32 %v297_v15  ;;  %vm425_vm7 = vcmp.eq.s32.totalorder %v420_v57, 2 }
  0xd1   : > { %vm422_vm8 = vcmp.eq.s32.totalorder %v420_v57, 0  ;;  %vm421_vm9 = vcmp.lt.s32.totalorder %v420_v57, 2 }
  0xd2   : > { %v302_v21 = vand.u32 2147483647, %v301_v18  ;;  %vm668_vm13 = vcmp.lt.s32.totalorder %v667_v19, 0 }
  0xd3   : > { %v397_v26 = vsel %vm668_vm13, 0, %v667_v19 }
  0xd4   : > { %v305_v23 = vmul.f32 %v304_v22, %v302_v21  ;;  %v398_v4 = vsub.s32 32, %v397_v26  ;;  %v402_v28 = vsub.s32 4294967266, %v397_v26  ;;  %v399_v25 = vshll.u32 %v390_v1, %v397_v26 }
  0xd6   : > { %v306_v29 = vxor.u32 2147483648, %v305_v23  ;;  %v400_v30 = vshrl.u32 %v382_v3, %v398_v4  ;;  %v403_v31 = vadd.s32 127, %v402_v28 }
  0xd8   : > { %v307_v32 = vsel %vm224_vm14, %v306_v29, %v305_v23  ;;  %v401_v35 = vor.u32 %v400_v30, %v399_v25  ;;  %v404_v36 = vshll.u32 %v403_v31, 23 }
  0xd9   : > { %v310_v34 = vsel %vm223_vm15, %v959_v7, %v307_v32 }
  0xda   : > { %793 = vcosq.f32 %v310_v34  ;;  %v405_v39 = vor.u32 4788187, %v404_v36  ;;  %v408_v40 = vcvt.s32.f32 %v401_v35 }
  0xdb   : > { %795 = vsinq.f32 %v310_v34 }
  0xdc   : > { %v406_v37 = vand.u32 2147483647, %v405_v39 }
  0xde   : > { %v409_v42 = vmul.f32 %v408_v40, %v406_v37 }
  0xe0   : > { %v410_v44 = vxor.u32 2147483648, %v409_v42 }
  0xe2   : > { %v411_v45 = vsel %vm328_vm0, %v410_v44, %v409_v42 }
  0xe3   : > { %v414_v49 = vsel %vm1017_vm1, %v965_v14, %v411_v45 }
  0xe4   : > { %v794_v48 = vpop.eup %793  ;;  %797 = vcosq.f32 %v414_v49 }
  0xe5   : > { %v796_v50 = vpop.eup %795  ;;  %v322_v27 = vxor.u32 2147483648, %v794_v48  ;;  %799 = vsinq.f32 %v414_v49 }
  0xe6   : > { %v319_v51 = vxor.u32 2147483648, %v796_v50 }
  0xe7   : > { %v323_v20 = vsel %vm321_vm2, %v322_v27, %v796_v50 }
  0xe8   : > { %v320_v53 = vsel %vm318_vm3, %v794_v48, %v319_v51 }
  0xe9   : > { %v324_v54 = vsel %vm317_vm5, %v320_v53, %v323_v20 }
  0xea   : > { %v325_v56 = vsel %vm314_vm6, nan, %v324_v54 }
  0xeb   : > { %431 = vst.msk [vmem:[%s1027_s6] sm:$0xff] %vm430_vm4, %v325_v56 }
  0xee   : > { %v798_v58 = vpop.eup %797 }
  0xef   : > { %v800_v59 = vpop.eup %799  ;;  %v426_v60 = vxor.u32 2147483648, %v798_v58  ;;  %439 = sbr.rel (!%p941_p4) target bundleno = 295 (0x127), region = 36 }
  0xf0   : > { %v423_v61 = vxor.u32 2147483648, %v800_v59 }
  0xf1   : > { %v427_v62 = vsel %vm425_vm7, %v426_v60, %v800_v59 }
  0xf2   : > { %v424_v63 = vsel %vm422_vm8, %v798_v58, %v423_v61 }
  0xf3   : > { %v428_v7 = vsel %vm421_vm9, %v424_v63, %v427_v62 }
  0xf4   : > { %v429_v0 = vsel %vm418_vm10, nan, %v428_v7 }
  0xf5   : > { %432 = vst.msk [vmem:[%s1027_s6 + $0x8] sm:$0xff] %vm430_vm4, %v429_v0 }
  0xf6   : > { %s1086_s7 = smov (!%p442_p8, %s441_s7), 2 }
  0xf7   : > { %s671_s12 = sshll.u32 %s1086_s7, 7 }
  0xf8   : > { %p674_p9 = scmp.eq.s32.totalorder %s671_s12, 0 }
  0xf9   : > { %s1047_s14 = sshrl.u32 (!%p674_p9), %s1086_s7, 1 }
  0xfa   : > { %450 = sbr.rel (%p674_p9) target bundleno = 295 (0x127), region = 40  ;;  %p675_p10 = scmp.le.s32.totalorder (!%p674_p9), %s1047_s14, 0 }
 0x101   : > { %608 = sbr.rel (%p675_p10) target bundleno = 274 (0x112), region = 116  ;;  %s857_s15 = smov (!%p675_p10), %s1041_s11  }
 0x102   : > { %s861_s17 = smov (!%p675_p10), %s1027_s6   ;;  %s865_s18 = smov (!%p675_p10), 0  }
 0x103   : > { %s869_s20 = smov (!%p675_p10), 0  }
 0x108 LB: >> { %v514_v14 = vld [vmem:[%s863_s17] sm:$0xff]  ;;  %v516_v1 = vld [vmem:[%s863_s17 + $0x8] sm:$0xff]  ;;  %s518_s21 = sadd.s32 1, %s867_s18  ;;  %s508_s20 = sadd.s32 1, %s871_s20   ;;  %s871_s20 = sphi %s869_s20, %s508_s20   ;;  %s867_s18 = sphi %s865_s18, %s866_s18   ;;  %s863_s17 = sphi %s861_s17, %s523_s17   ;;  %s859_s15 = sphi %s857_s15, %s524_s15  }
 0x109   : >> { %515 = vst [vmem:[%s859_s15] sm:$0xff] %v514_v14  ;;  %517 = vst [vmem:[%s859_s15 + $0x8] sm:$0xff] %v516_v1  ;;  %p519_p11 = scmp.ge.s32.totalorder %s518_s21, %s1047_s14  ;;  %p507_p12 = scmp.ge.s32.totalorder %s508_s20, %s1047_s14 }
 0x10b   : >> { %s1088_s21 = smov (%p519_p11, %s518_s21), 0  ;;  %510 = sbr.rel (!%p507_p12) target bundleno = 264 (0x108), region = 122 }
 0x10c   : >> { %s676_s22 = sshll.u32 %s1088_s21, 4  ;;  %s866_s18 = smov %s1088_s21  }
 0x10d   : >> { %s523_s17 = scalar_lea.vmem %s1027_s6, %s676_s22 [#allocation2]   ;;  %s524_s15 = scalar_lea.vmem %s1041_s11, %s676_s22  }
 0x112 PF: > { %s1057_s23 = sand.u32 1, %s1086_s7   ;;  %s687_s24 = sshll.u32 %s1047_s14, 4 }
 0x113   : > { %s529_s25 = scalar_lea.vmem %s1027_s6, %s687_s24 [#allocation2]   ;;  %s531_s26 = scalar_lea.vmem %s1041_s11, %s687_s24  }
 0x114   : > { %p681_p13 = scmp.le.s32.totalorder %s1057_s23, 0 }
 0x115   : > { %s873_s27 = smov (!%p681_p13), %s531_s26   ;;  %s877_s28 = smov (!%p681_p13), %s529_s25  }
 0x116   : > { %622 = sbr.rel (%p681_p13) target bundleno = 295 (0x127), region = 127  ;;  %s881_s29 = smov (!%p681_p13), 0  }
 0x117   : > { %s885_s30 = smov (!%p681_p13), 0  }
 0x11d LB: >> { %v541_v2 = vld [vmem:[%s879_s28] sm:$0xff]  ;;  %s543_s4 = sadd.s32 1, %s883_s29  ;;  %s535_s30 = sadd.s32 1, %s887_s30   ;;  %s887_s30 = sphi %s885_s30, %s535_s30   ;;  %s883_s29 = sphi %s881_s29, %s882_s29   ;;  %s879_s28 = sphi %s877_s28, %s548_s28   ;;  %s875_s27 = sphi %s873_s27, %s549_s27  }
 0x11e   : >> { %542 = vst [vmem:[%s875_s27] sm:$0xff] %v541_v2  ;;  %p544_p0 = scmp.ge.s32.totalorder %s543_s4, %s1057_s23  ;;  %p534_p1 = scmp.ge.s32.totalorder %s535_s30, %s1057_s23 }
 0x120   : >> { %s1090_s4 = smov (%p544_p0, %s543_s4), 0  ;;  %537 = sbr.rel (!%p534_p1) target bundleno = 285 (0x11d), region = 133 }
 0x121   : >> { %s682_s5 = sshll.u32 %s1090_s4, 3  ;;  %s882_s29 = smov %s1090_s4  }
 0x122   : >> { %s548_s28 = scalar_lea.vmem %s529_s25, %s682_s5 [#allocation2]   ;;  %s549_s27 = scalar_lea.vmem %s531_s26, %s682_s5  }
 0x127 PF: > { %p10_p2 = scmp.ge.s32.totalorder %s931_s16, 5   ;;  %s1082_s12 = smov %s851_s13 }
 0x128   : > { %s1083_s13 = smov %s939_s19  ;;  %s1084_s14 = smov %s931_s16 }
 0x129   :  { %12 = sbr.rel (!%p10_p2) target bundleno = 2 (0x2), region = 144 }

</bundles_post_ra>
